<compile_context>
chip_gen: v7x
topology: tpu7x:2x2x1
jax: 0.10.0
libtpu: 0.0.40
codegen_flags: <defaults>
</compile_context>

<pallas_src>
import functools

import jax
import jax.numpy as jnp
from jax import lax
from jax.experimental import pallas as pl
from jax.experimental.pallas import tpu as pltpu

LANE = 128
SUBLANE = 8
MAX_TILE_BYTES = 1 << 20          # per-input tile: 2048 rows f32 / 4096 rows bf16
VMEM_LIMIT_BYTES = 32 << 20       # 4 streams x 2 bufs x 1 MiB = 8 MiB + headroom

_ARBITRARY = getattr(pltpu, "ARBITRARY", "arbitrary")
_CORE_PARALLEL = getattr(pltpu, "CORE_PARALLEL", "parallel")


def _num_tensorcores() -> int:
    """TensorCores addressable by one Mosaic kernel (megacore split).

    v5e / v6e expose 1 TC per chip; v7x exposes 2. Defaults to 1, which is
    always safe (the split axis degenerates to size 1 / a no-op).
    """
    try:
        kind = (getattr(jax.devices()[0], "device_kind", "") or "").lower()
    except Exception:
        return 1
    return 2 if ("v7" in kind or "tpu7" in kind.replace(" ", "")) else 1


def _plan(rows, row_align, max_tile_rows, cores):
    """Static trace-time planning.

    Returns (tile_rows, num_splits, tiles_per_split, needs_row_mask) such that
      * tiles are as large as the byte budget allows,
      * the grid covers `rows` exactly (no in-kernel row mask) whenever an
        exact tiling with reasonably large tiles exists,
      * the core split only exists on multi-TC chips with enough tiles.
    """
    cap = min(max_tile_rows, rows)
    cap = max(row_align, (cap // row_align) * row_align)

    # Preferred: exact tiling (no mask), tiles >= cap/2, even split per core.
    lo = max(row_align, ((cap // 2) // row_align) * row_align)
    for num_splits in ([cores, 1] if cores > 1 else [1]):
        d = cap
        while d >= lo:
            if rows % d == 0 and (rows // d) % num_splits == 0:
                return d, num_splits, (rows // d) // num_splits, False
            d -= row_align

    # Fallback: biggest tile, ragged last tile masked inside the kernel.
    num_tiles = -(-rows // cap)
    num_splits = cores if (cores > 1 and num_tiles >= cores) else 1
    tiles_per_split = -(-num_tiles // num_splits)
    needs_mask = (num_splits * tiles_per_split * cap) != rows
    return cap, num_splits, tiles_per_split, needs_mask


def _masked_sums_kernel(out_ref, imout_ref, depthout_ref, target_ref, acc_ref,
                        *, rows, tile_rows, tiles_per_split, needs_row_mask):
    """Accumulate, per split s, into acc_ref (block shape (1, 4, 8, 128)):
         acc[0,0] += per-lane partial sum of (target - out)^2      over valid
         acc[0,1] += per-lane partial sum of (target - imout)^2    over valid
         acc[0,2] += per-lane partial sum of (target - depthout)^2 over valid
         acc[0,3] += per-lane partial count of valid elements (target > 0)
    The accumulator is the output block (constant along the inner "arbitrary"
    axis); the only cross-lane reduction happens once, in the wrapper.
    """
    j = pl.program_id(1)

    @pl.when(j == 0)
    def _():
        acc_ref[...] = jnp.zeros_like(acc_ref)

    t = target_ref[...].astype(jnp.float32)
    mask = t > 0.0

    if needs_row_mask:
        # Fallback path only: the last tile of a split may be partial (or a
        # phantom re-read of the last real block); mask out rows past the true
        # end of the data. Everything here except program_id is static Python.
        s = pl.program_id(0)
        global_tile = s * tiles_per_split + j
        remaining = rows - global_tile * tile_rows
        row_idx = lax.broadcasted_iota(jnp.int32, t.shape, 0)
        mask = jnp.logical_and(mask, row_idx < remaining)

    zero = jnp.zeros_like(t)
    # Select (not mask-multiply) so garbage in clipped partial blocks
    # (possibly NaN/Inf) can never leak through.
    d_c = jnp.where(mask, t - out_ref[...].astype(jnp.float32), zero)
    d_i = jnp.where(mask, t - imout_ref[...].astype(jnp.float32), zero)
    d_d = jnp.where(mask, t - depthout_ref[...].astype(jnp.float32), zero)
    cnt = mask.astype(jnp.float32)

    def fold(x):  # (tile_rows, LANE) -> (8, LANE); pure VPU element-wise adds
        return x.reshape(-1, SUBLANE, LANE).sum(axis=0)

    acc_ref[0, 0] += fold(d_c * d_c)
    acc_ref[0, 1] += fold(d_i * d_i)
    acc_ref[0, 2] += fold(d_d * d_d)
    acc_ref[0, 3] += fold(cnt)


def _partial_sums_xla(o, i, d, t):
    """Plain-XLA masked partial sums for the tiny tail (or tiny inputs)."""
    t = t.astype(jnp.float32)
    mask = t > 0.0

    def ssq(x):
        diff = jnp.where(mask, t - x.astype(jnp.float32), 0.0)
        return jnp.sum(diff * diff)

    return jnp.stack([ssq(o), ssq(i), ssq(d), jnp.sum(mask.astype(jnp.float32))])


def masked_mse_loss_is(out, imout, depthout, target, lambdas):
    assert out.ndim == imout.ndim == depthout.ndim == target.ndim, \
        "inconsistent dimensions"
    assert out.shape == imout.shape == depthout.shape == target.shape

    flats = [x.reshape(-1) for x in (out, imout, depthout, target)]
    total = flats[0].shape[0]

    itemsizes = [jnp.dtype(x.dtype).itemsize for x in flats]
    # Packed-sublane row granularity: 8 (f32), 16 (bf16), 32 (int8/fp8).
    row_align = SUBLANE * max(1, 4 // min(itemsizes))
    max_tile_rows = max(row_align,
                        (MAX_TILE_BYTES // (LANE * max(itemsizes)))
                        // row_align * row_align)

    rows = total // LANE
    sums = jnp.zeros((4,), jnp.float32)
    covered = 0

    if rows >= row_align:
        tile_rows, num_splits, tiles_per_split, needs_mask = _plan(
            rows, row_align, max_tile_rows, _num_tensorcores())
        num_tiles = -(-rows // tile_rows)

        def slab(x):
            if rows * LANE == total:
                return x.reshape(rows, LANE)   # free reshape, no HBM copy
            # Ragged lane remainder (<128 elems): run the kernel on the
            # 128-aligned prefix and fold the remainder in XLA below. (XLA may
            # materialize this slice; only hit for non-128-multiple sizes.)
            return lax.slice(x, (0,), (rows * LANE,)).reshape(rows, LANE)

        kernel = functools.partial(
            _masked_sums_kernel,
            rows=rows, tile_rows=tile_rows,
            tiles_per_split=tiles_per_split, needs_row_mask=needs_mask)

        def in_map(s, j):
            # Clamp phantom tiles (fallback path only) onto the last real
            # block; the in-kernel row mask zeroes their contribution. In the
            # exact-tiling path the min() is an identity.
            return (jnp.minimum(s * tiles_per_split + j, num_tiles - 1), 0)

        tile_spec = pl.BlockSpec((tile_rows, LANE), in_map)
        split_sem = _CORE_PARALLEL if num_splits > 1 else _ARBITRARY

        partials = pl.pallas_call(
            kernel,
            out_shape=jax.ShapeDtypeStruct((num_splits, 4, SUBLANE, LANE),
                                           jnp.float32),
            grid_spec=pltpu.PrefetchScalarGridSpec(
                num_scalar_prefetch=0,
                grid=(num_splits, tiles_per_split),
                in_specs=[tile_spec] * 4,
                out_specs=pl.BlockSpec((1, 4, SUBLANE, LANE),
                                       lambda s, j: (s, 0, 0, 0)),
            ),
            compiler_params=pltpu.CompilerParams(
                dimension_semantics=(split_sem, _ARBITRARY),
                vmem_limit_bytes=VMEM_LIMIT_BYTES),
        )(*(slab(x) for x in flats))

        sums = jnp.sum(partials, axis=(0, 2, 3))   # (4,) tiny final reduction
        covered = rows * LANE

    if covered < total:
        # <128-element lane remainder, or tiny-input fallback: plain XLA.
        sums = sums + _partial_sums_xla(*(f[covered:] for f in flats))

    count = sums[3]                    # NaN/Inf losses if no valid pixel,
    comb_loss = sums[0] / count        # matching PyTorch's empty-mean.
    im_loss = sums[1] / count
    depth_loss = sums[2] / count
    total_loss = comb_loss + lambdas * im_loss + lambdas * depth_loss
    # TODO(synk): PyTorch returns comb_loss.item() (host scalar); we return a
    # traced JAX scalar instead to stay jit-compatible.
    return total_loss, comb_loss


def _reference(out, imout, depthout, target, lambdas):
    mask = target > 0
    cnt = jnp.sum(mask)

    def mse(x):
        d = jnp.where(mask, target - x, 0.0)
        return jnp.sum(d * d) / cnt

    comb = mse(out)
    return comb + lambdas * mse(imout) + lambdas * mse(depthout), comb


if __name__ == "__main__":
    key = jax.random.PRNGKey(0)
    k1, k2, k3, k4 = jax.random.split(key, 4)
    shape = (2, 4, 16, 16)  # N, C, H, W

    out = jax.random.normal(k1, shape, jnp.float32)
    imout = jax.random.normal(k2, shape, jnp.float32)
    depthout = jax.random.normal(k3, shape, jnp.float32)
    # target: mix of positive depths and zeros (invalid)
    target = jax.random.uniform(k4, shape, jnp.float32, minval=-1.0, maxval=5.0)
    target = jnp.where(target > 0.0, target, 0.0)
    lambdas = 0.5

    total_loss, comb_loss = masked_mse_loss_is(out, imout, depthout, target,
                                               lambdas)
    total_loss = jax.block_until_ready(total_loss)
    comb_loss = jax.block_until_ready(comb_loss)

    ref_total, ref_comb = _reference(out, imout, depthout, target, lambdas)
    assert jnp.allclose(total_loss, ref_total, rtol=1e-5, atol=1e-5)
    assert jnp.allclose(comb_loss, ref_comb, rtol=1e-5, atol=1e-5)

    print("KERNEL_OK")
</pallas_src>

<mosaic_0001>
module attributes {stable_mosaic.version = 11 : i64} {
  func.func @_masked_sums_kernel(%arg0: i32, %arg1: i32, %arg2: memref<16x128xf32, #tpu.memory_space<vmem>>, %arg3: memref<16x128xf32, #tpu.memory_space<vmem>>, %arg4: memref<16x128xf32, #tpu.memory_space<vmem>>, %arg5: memref<16x128xf32, #tpu.memory_space<vmem>>, %arg6: memref<1x4x8x128xf32, #tpu.memory_space<vmem>>) attributes {dimension_semantics = [#tpu.dimension_semantics<arbitrary>, #tpu.dimension_semantics<arbitrary>], iteration_bounds = array<i64: 1, 1>, scalar_prefetch = 0 : i64, scratch_operands = 0 : i64, tpu.core_type = #tpu.core_type<tc>, window_params = [{transform_indices = @transform_0, window_bounds = array<i64: 16, 128>}, {transform_indices = @transform_1, window_bounds = array<i64: 16, 128>}, {transform_indices = @transform_2, window_bounds = array<i64: 16, 128>}, {transform_indices = @transform_3, window_bounds = array<i64: 16, 128>}, {transform_indices = @transform_4, window_bounds = array<i64: 1, 4, 8, 128>}]} {
    %c0_i32 = arith.constant 0 : i32
    %0 = arith.cmpi eq, %arg1, %c0_i32 : i32
    %1 = arith.extui %0 : i1 to i32
    %c0_i32_0 = arith.constant 0 : i32
    %2 = arith.cmpi ne, %1, %c0_i32_0 : i32
    scf.if %2 {
      %cst_42 = arith.constant 0.000000e+00 : f32
      %53 = vector.broadcast %cst_42 : f32 to vector<1x4x8x128xf32>
      %c0_43 = arith.constant 0 : index
      %c0_44 = arith.constant 0 : index
      %c0_45 = arith.constant 0 : index
      %c0_46 = arith.constant 0 : index
      %54 = vector.load %arg6[%c0_43, %c0_44, %c0_45, %c0_46] : memref<1x4x8x128xf32, #tpu.memory_space<vmem>>, vector<1x4x8x128xf32>
      tpu.vector_store %arg6[%c0_43, %c0_44, %c0_45, %c0_46], %53 {strides = array<i32>} : memref<1x4x8x128xf32, #tpu.memory_space<vmem>>, vector<1x4x8x128xf32>,
    } else {
    }
    %c0 = arith.constant 0 : index
    %c0_1 = arith.constant 0 : index
    %3 = vector.load %arg5[%c0, %c0_1] : memref<16x128xf32, #tpu.memory_space<vmem>>, vector<16x128xf32>
    %cst = arith.constant 0.000000e+00 : f32
    %4 = vector.broadcast %cst : f32 to vector<16x128xf32>
    %5 = arith.cmpf ogt, %3, %4 : vector<16x128xf32>
    %cst_2 = arith.constant 0.000000e+00 : f32
    %6 = vector.broadcast %cst_2 : f32 to vector<16x128xf32>
    %c0_3 = arith.constant 0 : index
    %c0_4 = arith.constant 0 : index
    %7 = vector.load %arg2[%c0_3, %c0_4] : memref<16x128xf32, #tpu.memory_space<vmem>>, vector<16x128xf32>
    %8 = arith.subf %3, %7 : vector<16x128xf32>
    %9 = arith.select %5, %8, %6 : vector<16x128xi1>, vector<16x128xf32>
    %c0_5 = arith.constant 0 : index
    %c0_6 = arith.constant 0 : index
    %10 = vector.load %arg3[%c0_5, %c0_6] : memref<16x128xf32, #tpu.memory_space<vmem>>, vector<16x128xf32>
    %11 = arith.subf %3, %10 : vector<16x128xf32>
    %12 = arith.select %5, %11, %6 : vector<16x128xi1>, vector<16x128xf32>
    %c0_7 = arith.constant 0 : index
    %c0_8 = arith.constant 0 : index
    %13 = vector.load %arg4[%c0_7, %c0_8] : memref<16x128xf32, #tpu.memory_space<vmem>>, vector<16x128xf32>
    %14 = arith.subf %3, %13 : vector<16x128xf32>
    %15 = arith.select %5, %14, %6 : vector<16x128xi1>, vector<16x128xf32>
    %16 = arith.extui %5 : vector<16x128xi1> to vector<16x128xi32>
    %17 = arith.sitofp %16 : vector<16x128xi32> to vector<16x128xf32>
    %c0_9 = arith.constant 0 : index
    %c0_10 = arith.constant 0 : index
    %c0_11 = arith.constant 0 : index
    %c0_12 = arith.constant 0 : index
    %18 = vector.load %arg6[%c0_9, %c0_10, %c0_11, %c0_12] : memref<1x4x8x128xf32, #tpu.memory_space<vmem>>, vector<1x1x8x128xf32>
    %19 = vector.shape_cast %18 : vector<1x1x8x128xf32> to vector<8x128xf32>
    %20 = arith.mulf %9, %9 : vector<16x128xf32>
    %21 = vector.shape_cast %20 : vector<16x128xf32> to vector<2x8x128xf32>
    %cst_13 = arith.constant dense<0.000000e+00> : vector<8x128xf32>
    %22 = vector.multi_reduction <add>, %21, %cst_13 [0] : vector<2x8x128xf32> to vector<8x128xf32>
    %23 = arith.addf %19, %22 : vector<8x128xf32>
    %c0_14 = arith.constant 0 : index
    %c0_15 = arith.constant 0 : index
    %c0_16 = arith.constant 0 : index
    %c0_17 = arith.constant 0 : index
    %24 = vector.load %arg6[%c0_14, %c0_15, %c0_16, %c0_17] : memref<1x4x8x128xf32, #tpu.memory_space<vmem>>, vector<1x1x8x128xf32>
    %25 = vector.shape_cast %24 : vector<1x1x8x128xf32> to vector<8x128xf32>
    %26 = vector.shape_cast %23 : vector<8x128xf32> to vector<1x1x8x128xf32>
    tpu.vector_store %arg6[%c0_14, %c0_15, %c0_16, %c0_17], %26 {strides = array<i32>} : memref<1x4x8x128xf32, #tpu.memory_space<vmem>>, vector<1x1x8x128xf32>,
    %c0_18 = arith.constant 0 : index
    %c1 = arith.constant 1 : index
    %c0_19 = arith.constant 0 : index
    %c0_20 = arith.constant 0 : index
    %27 = vector.load %arg6[%c0_18, %c1, %c0_19, %c0_20] : memref<1x4x8x128xf32, #tpu.memory_space<vmem>>, vector<1x1x8x128xf32>
    %28 = vector.shape_cast %27 : vector<1x1x8x128xf32> to vector<8x128xf32>
    %29 = arith.mulf %12, %12 : vector<16x128xf32>
    %30 = vector.shape_cast %29 : vector<16x128xf32> to vector<2x8x128xf32>
    %cst_21 = arith.constant dense<0.000000e+00> : vector<8x128xf32>
    %31 = vector.multi_reduction <add>, %30, %cst_21 [0] : vector<2x8x128xf32> to vector<8x128xf32>
    %32 = arith.addf %28, %31 : vector<8x128xf32>
    %c0_22 = arith.constant 0 : index
    %c1_23 = arith.constant 1 : index
    %c0_24 = arith.constant 0 : index
    %c0_25 = arith.constant 0 : index
    %33 = vector.load %arg6[%c0_22, %c1_23, %c0_24, %c0_25] : memref<1x4x8x128xf32, #tpu.memory_space<vmem>>, vector<1x1x8x128xf32>
    %34 = vector.shape_cast %33 : vector<1x1x8x128xf32> to vector<8x128xf32>
    %35 = vector.shape_cast %32 : vector<8x128xf32> to vector<1x1x8x128xf32>
    tpu.vector_store %arg6[%c0_22, %c1_23, %c0_24, %c0_25], %35 {strides = array<i32>} : memref<1x4x8x128xf32, #tpu.memory_space<vmem>>, vector<1x1x8x128xf32>,
    %c0_26 = arith.constant 0 : index
    %c2 = arith.constant 2 : index
    %c0_27 = arith.constant 0 : index
    %c0_28 = arith.constant 0 : index
    %36 = vector.load %arg6[%c0_26, %c2, %c0_27, %c0_28] : memref<1x4x8x128xf32, #tpu.memory_space<vmem>>, vector<1x1x8x128xf32>
    %37 = vector.shape_cast %36 : vector<1x1x8x128xf32> to vector<8x128xf32>
    %38 = arith.mulf %15, %15 : vector<16x128xf32>
    %39 = vector.shape_cast %38 : vector<16x128xf32> to vector<2x8x128xf32>
    %cst_29 = arith.constant dense<0.000000e+00> : vector<8x128xf32>
    %40 = vector.multi_reduction <add>, %39, %cst_29 [0] : vector<2x8x128xf32> to vector<8x128xf32>
    %41 = arith.addf %37, %40 : vector<8x128xf32>
    %c0_30 = arith.constant 0 : index
    %c2_31 = arith.constant 2 : index
    %c0_32 = arith.constant 0 : index
    %c0_33 = arith.constant 0 : index
    %42 = vector.load %arg6[%c0_30, %c2_31, %c0_32, %c0_33] : memref<1x4x8x128xf32, #tpu.memory_space<vmem>>, vector<1x1x8x128xf32>
    %43 = vector.shape_cast %42 : vector<1x1x8x128xf32> to vector<8x128xf32>
    %44 = vector.shape_cast %41 : vector<8x128xf32> to vector<1x1x8x128xf32>
    tpu.vector_store %arg6[%c0_30, %c2_31, %c0_32, %c0_33], %44 {strides = array<i32>} : memref<1x4x8x128xf32, #tpu.memory_space<vmem>>, vector<1x1x8x128xf32>,
    %c0_34 = arith.constant 0 : index
    %c3 = arith.constant 3 : index
    %c0_35 = arith.constant 0 : index
    %c0_36 = arith.constant 0 : index
    %45 = vector.load %arg6[%c0_34, %c3, %c0_35, %c0_36] : memref<1x4x8x128xf32, #tpu.memory_space<vmem>>, vector<1x1x8x128xf32>
    %46 = vector.shape_cast %45 : vector<1x1x8x128xf32> to vector<8x128xf32>
    %47 = vector.shape_cast %17 : vector<16x128xf32> to vector<2x8x128xf32>
    %cst_37 = arith.constant dense<0.000000e+00> : vector<8x128xf32>
    %48 = vector.multi_reduction <add>, %47, %cst_37 [0] : vector<2x8x128xf32> to vector<8x128xf32>
    %49 = arith.addf %46, %48 : vector<8x128xf32>
    %c0_38 = arith.constant 0 : index
    %c3_39 = arith.constant 3 : index
    %c0_40 = arith.constant 0 : index
    %c0_41 = arith.constant 0 : index
    %50 = vector.load %arg6[%c0_38, %c3_39, %c0_40, %c0_41] : memref<1x4x8x128xf32, #tpu.memory_space<vmem>>, vector<1x1x8x128xf32>
    %51 = vector.shape_cast %50 : vector<1x1x8x128xf32> to vector<8x128xf32>
    %52 = vector.shape_cast %49 : vector<8x128xf32> to vector<1x1x8x128xf32>
    tpu.vector_store %arg6[%c0_38, %c3_39, %c0_40, %c0_41], %52 {strides = array<i32>} : memref<1x4x8x128xf32, #tpu.memory_space<vmem>>, vector<1x1x8x128xf32>,
    return
  }
  func.func @transform_0(%arg0: i32, %arg1: i32) -> (i32, i32) {
    %c1_i32 = arith.constant 1 : i32
    %0 = arith.muli %arg0, %c1_i32 : i32
    %1 = arith.addi %0, %arg1 : i32
    %c0_i32 = arith.constant 0 : i32
    %2 = arith.minsi %1, %c0_i32 : i32
    %c0_i32_0 = arith.constant 0 : i32
    %c0_i32_1 = arith.constant 0 : i32
    return %2, %c0_i32_0 : i32, i32
  }
  func.func @transform_1(%arg0: i32, %arg1: i32) -> (i32, i32) {
    %c1_i32 = arith.constant 1 : i32
    %0 = arith.muli %arg0, %c1_i32 : i32
    %1 = arith.addi %0, %arg1 : i32
    %c0_i32 = arith.constant 0 : i32
    %2 = arith.minsi %1, %c0_i32 : i32
    %c0_i32_0 = arith.constant 0 : i32
    %c0_i32_1 = arith.constant 0 : i32
    return %2, %c0_i32_0 : i32, i32
  }
  func.func @transform_2(%arg0: i32, %arg1: i32) -> (i32, i32) {
    %c1_i32 = arith.constant 1 : i32
    %0 = arith.muli %arg0, %c1_i32 : i32
    %1 = arith.addi %0, %arg1 : i32
    %c0_i32 = arith.constant 0 : i32
    %2 = arith.minsi %1, %c0_i32 : i32
    %c0_i32_0 = arith.constant 0 : i32
    %c0_i32_1 = arith.constant 0 : i32
    return %2, %c0_i32_0 : i32, i32
  }
  func.func @transform_3(%arg0: i32, %arg1: i32) -> (i32, i32) {
    %c1_i32 = arith.constant 1 : i32
    %0 = arith.muli %arg0, %c1_i32 : i32
    %1 = arith.addi %0, %arg1 : i32
    %c0_i32 = arith.constant 0 : i32
    %2 = arith.minsi %1, %c0_i32 : i32
    %c0_i32_0 = arith.constant 0 : i32
    %c0_i32_1 = arith.constant 0 : i32
    return %2, %c0_i32_0 : i32, i32
  }
  func.func @transform_4(%arg0: i32, %arg1: i32) -> (i32, i32, i32, i32) {
    %c0_i32 = arith.constant 0 : i32
    %c0_i32_0 = arith.constant 0 : i32
    %c0_i32_1 = arith.constant 0 : i32
    %c0_i32_2 = arith.constant 0 : i32
    return %arg0, %c0_i32, %c0_i32_0, %c0_i32_1 : i32, i32, i32, i32
  }
}

</mosaic_0001>

<bundles_post_ra>
// kernel: tpu_custom_call.1
= control target key start
LH: loop header
LB: loop body
LE: loop exit
PB: predicated region body
PF: predicated region fallthrough
CT: control target
= control target key end

     0   :  { %9 = vsyncpa [#allocation3], 0  ;;  %s457_s0 = inlined_call_operand.hbm [shape: f32[16,128], index: 0, kind: input, shape index: {}]   ;;  %s458_s1 = inlined_call_operand.hbm [shape: f32[16,128], index: 1, kind: input, shape index: {}]   ;;  %s459_s2 = inlined_call_operand.hbm [shape: f32[16,128], index: 2, kind: input, shape index: {}]   ;;  %s460_s3 = inlined_call_operand.hbm [shape: f32[16,128], index: 3, kind: input, shape index: {}]   ;;  %s461_s4 = inlined_call_operand.hbm [shape: f32[1,4,8,128], index: 4, kind: output, shape index: {}]  }
   0x1   :  { %10 = vsyncpa [#allocation6], 0 }
   0x2   :  { %11 = vsyncpa [#allocation9], 0 }
   0x3   :  { %12 = vsyncpa [#allocation4], 0  ;;  %s327_s15 = smov [#allocation5]   ;;  %s328_s17 = smov [#allocation2]  }
   0x4   :  { %s42_s16 = sshll.u32 %s327_s15, 4  ;;  %s24_s18 = sshll.u32 %s328_s17, 4  ;;  %s43_s16 = int_to_ptr.vmem [resolvable:$true] %s42_s16  ;;  %s360_s18 = int_to_ptr.vmem [resolvable:$true] %s24_s18 }
   0x5   :  { %s209_s21 = scalar_lea.hbm %s458_s1, 256 }
   0x6   :  { %p210_p0 = scmp.ne.s32.totalorder %s458_s1, %s209_s21  ;;  %p213_p1 = scmp.lt.u32.totalorder %s209_s21, %s458_s1 }
   0x8   :  { %p215_p2 = pnand %p213_p1, %p210_p0 }
   0xa   :  { %218 = shalt.err (!%p215_p2)
}
   0xb   :  { %s219_s26 = scalar_lea.vmem %s43_s16, 256  ;;  %p224_p4 = scmp.lt.s32.totalorder %s43_s16, %s43_s16 }
   0xc   :  { %p220_p3 = scmp.ne.s32.totalorder %s43_s16, %s219_s26  ;;  %p225_p5 = scmp.lt.s32.totalorder %s219_s26, %s219_s26 }
   0xe   :  { %p226_p6 = por %p225_p5, %p224_p4 }
  0x10   :  { %p227_p7 = pnand %p226_p6, %p220_p3 }
  0x12   :  { %230 = shalt.err (!%p227_p7)
}
  0x13   :  { %s329_s27 = smov 128   ;;  %s330_s28 = smov 8  }
  0x14   :  { %48 = dma.hbm_to_vmem [thread:$0]  %s458_s1, 256, %s43_s16, [#allocation6], %s329_s27, %s329_s27, %s330_s28  }
  0x15   :  { %s231_s7 = scalar_lea.hbm %s457_s0, 256 }
  0x16   :  { %p232_p8 = scmp.ne.s32.totalorder %s457_s0, %s231_s7  ;;  %p235_p9 = scmp.lt.u32.totalorder %s231_s7, %s457_s0 }
  0x18   :  { %p237_p10 = pnand %p235_p9, %p232_p8 }
  0x1a   :  { %240 = shalt.err (!%p237_p10)
}
  0x1b   :  { %s241_s12 = scalar_lea.vmem %s360_s18, 256  ;;  %p246_p12 = scmp.lt.s32.totalorder %s360_s18, %s360_s18 }
  0x1c   :  { %p242_p11 = scmp.ne.s32.totalorder %s360_s18, %s241_s12  ;;  %p247_p13 = scmp.lt.s32.totalorder %s241_s12, %s241_s12 }
  0x1e   :  { %p248_p0 = por %p247_p13, %p246_p12 }
  0x20   :  { %p249_p1 = pnand %p248_p0, %p242_p11 }
  0x22   :  { %252 = shalt.err (!%p249_p1)
}
  0x23   :  { %30 = dma.hbm_to_vmem [thread:$0]  %s457_s0, 256, %s360_s18, [#allocation3], %s329_s27, %s329_s27, %s330_s28  }
  0x24   :  { %s331_s14 = smov [#allocation7]   ;;  %s332_s16 = smov [#allocation8]  }
  0x25   :  { %s60_s15 = sshll.u32 %s331_s14, 4  ;;  %s78_s17 = sshll.u32 %s332_s16, 4  ;;  %s61_s15 = int_to_ptr.vmem [resolvable:$true] %s60_s15  ;;  %s397_s17 = int_to_ptr.vmem [resolvable:$true] %s78_s17 }
  0x26   :  { %s253_s21 = scalar_lea.hbm %s459_s2, 256 }
  0x27   :  { %p254_p2 = scmp.ne.s32.totalorder %s459_s2, %s253_s21  ;;  %p257_p3 = scmp.lt.u32.totalorder %s253_s21, %s459_s2 }
  0x29   :  { %p259_p4 = pnand %p257_p3, %p254_p2 }
  0x2b   :  { %262 = shalt.err (!%p259_p4)
}
  0x2c   :  { %s263_s0 = scalar_lea.vmem %s61_s15, 256  ;;  %p268_p6 = scmp.lt.s32.totalorder %s61_s15, %s61_s15 }
  0x2d   :  { %p264_p5 = scmp.ne.s32.totalorder %s61_s15, %s263_s0  ;;  %p269_p7 = scmp.lt.s32.totalorder %s263_s0, %s263_s0 }
  0x2f   :  { %p270_p8 = por %p269_p7, %p268_p6 }
  0x31   :  { %p271_p9 = pnand %p270_p8, %p264_p5 }
  0x33   :  { %274 = shalt.err (!%p271_p9)
}
  0x34   :  { %66 = dma.hbm_to_vmem [thread:$0]  %s459_s2, 256, %s61_s15, [#allocation6], %s329_s27, %s329_s27, %s330_s28  }
  0x35   :  { %s275_s5 = scalar_lea.hbm %s460_s3, 256 }
  0x36   :  { %p276_p10 = scmp.ne.s32.totalorder %s460_s3, %s275_s5  ;;  %p279_p11 = scmp.lt.u32.totalorder %s275_s5, %s460_s3 }
  0x38   :  { %p281_p12 = pnand %p279_p11, %p276_p10 }
  0x3a   :  { %284 = shalt.err (!%p281_p12)
}
  0x3b   :  { %s285_s10 = scalar_lea.vmem %s397_s17, 256  ;;  %p290_p0 = scmp.lt.s32.totalorder %s397_s17, %s397_s17 }
  0x3c   :  { %p286_p13 = scmp.ne.s32.totalorder %s397_s17, %s285_s10  ;;  %p291_p1 = scmp.lt.s32.totalorder %s285_s10, %s285_s10 }
  0x3e   :  { %p292_p2 = por %p291_p1, %p290_p0 }
  0x40   :  { %p293_p3 = pnand %p292_p2, %p286_p13 }
  0x42   :  { %296 = shalt.err (!%p293_p3)
}
  0x43   :  { %84 = dma.hbm_to_vmem [thread:$0]  %s460_s3, 256, %s397_s17, [#allocation9], %s329_s27, %s329_s27, %s330_s28  }
  0x44   :  { %319 = dma.done.wait [#allocation3], 256  }
  0x45   :  { %320 = vsyncadd [#allocation3], 4294967040 }
  0x46   :  { %321 = dma.done.wait [#allocation6], 512  }
  0x47   :  { %322 = vsyncadd [#allocation6], 4294966784 }
  0x48   :  { %323 = dma.done.wait [#allocation9], 256  }
  0x49   :  { %324 = vsyncadd [#allocation9], 4294967040  ;;  %v121_v0 = vld [vmem:[#allocation8] sm:$0xff]  ;;  %v122_v1 = vld [vmem:[#allocation8 + $0x8] sm:$0xff]  ;;  %v333_v12 = vmov 0.0   ;;  %s334_s3 = smov [#allocation10]  }
  0x4a   :  { %v125_v2 = vld [vmem:[#allocation2] sm:$0xff]  ;;  %vm123_vm0 = vcmp.gt.f32.partialorder %v121_v0, 0.0  ;;  %vm124_vm1 = vcmp.gt.f32.partialorder %v122_v1, 0.0  ;;  %v126_v3 = vld [vmem:[#allocation2 + $0x8] sm:$0xff]  ;;  %v131_v5 = vld [vmem:[#allocation5] sm:$0xff]  ;;  %s177_s12 = sshll.u32 %s334_s3, 4  ;;  %s178_s12 = int_to_ptr.vmem [resolvable:$true] %s177_s12 }
  0x4b   :  { %v127_v4 = vsub.f32 %v121_v0, %v125_v2  ;;  %v132_v6 = vld [vmem:[#allocation5 + $0x8] sm:$0xff]  ;;  %v128_v7 = vsub.f32 %v122_v1, %v126_v3  ;;  %v133_v8 = vsub.f32 %v121_v0, %v131_v5  ;;  %v137_v10 = vld [vmem:[#allocation7] sm:$0xff]  ;;  %v138_v11 = vld [vmem:[#allocation7 + $0x8] sm:$0xff]  ;;  %v199_v13 = vsel %vm123_vm0, 1.0, %v333_v12  ;;  %s297_s1 = scalar_lea.vmem %s178_s12, 512  ;;  %p302_p5 = scmp.lt.s32.totalorder %s178_s12, %s178_s12 }
  0x4c   :  { %v134_v9 = vsub.f32 %v122_v1, %v132_v6  ;;  %v139_v15 = vsub.f32 %v121_v0, %v137_v10  ;;  %v140_v16 = vsub.f32 %v122_v1, %v138_v11  ;;  %v200_v17 = vsel %vm124_vm1, 1.0, %v333_v12  ;;  %p298_p4 = scmp.ne.s32.totalorder %s178_s12, %s297_s1  ;;  %p303_p6 = scmp.lt.s32.totalorder %s297_s1, %s297_s1 }
  0x4d   :  { %v129_v14 = vsel %vm123_vm0, %v127_v4, 0.0  ;;  %v130_v18 = vsel %vm124_vm1, %v128_v7, 0.0  ;;  %v135_v20 = vsel %vm123_vm0, %v133_v8, 0.0  ;;  %v169_v28 = vadd.f32 %v200_v17, %v199_v13 }
  0x4e   :  { %v148_v19 = vmul.f32 %v129_v14, %v129_v14  ;;  %v136_v21 = vsel %vm124_vm1, %v134_v9, 0.0  ;;  %v149_v22 = vmul.f32 %v130_v18, %v130_v18  ;;  %v155_v23 = vmul.f32 %v135_v20, %v135_v20  ;;  %p304_p7 = por %p303_p6, %p302_p5 }
  0x4f   :  { %v156_v24 = vmul.f32 %v136_v21, %v136_v21  ;;  %v141_v25 = vsel %vm123_vm0, %v139_v15, 0.0  ;;  %v142_v26 = vsel %vm124_vm1, %v140_v16, 0.0  ;;  %171 = vst [vmem:[#allocation10 + $0x18] sm:$0xff] %v169_v28 }
  0x50   :  { %v162_v27 = vmul.f32 %v141_v25, %v141_v25  ;;  %v150_v29 = vadd.f32 %v149_v22, %v148_v19  ;;  %v163_v31 = vmul.f32 %v142_v26, %v142_v26  ;;  %p305_p8 = pnand %p304_p7, %p298_p4 }
  0x51   :  { %v157_v30 = vadd.f32 %v156_v24, %v155_v23 }
  0x52   :  { %v164_v32 = vadd.f32 %v163_v31, %v162_v27  ;;  %152 = vst [vmem:[#allocation10] sm:$0xff] %v150_v29 }
  0x53   :  { %159 = vst [vmem:[#allocation10 + $0x8] sm:$0xff] %v157_v30 }
  0x54   :  { %166 = vst [vmem:[#allocation10 + $0x10] sm:$0xff] %v164_v32 }
  0x55   :  { %308 = shalt.err (!%p305_p8)
}
  0x56   :  { %s309_s15 = scalar_lea.hbm %s461_s4, 512 }
  0x57   :  { %p310_p9 = scmp.ne.s32.totalorder %s461_s4, %s309_s15  ;;  %p313_p10 = scmp.lt.u32.totalorder %s309_s15, %s461_s4 }
  0x59   :  { %p315_p11 = pnand %p313_p10, %p310_p9 }
  0x5b   :  { %318 = shalt.err (!%p315_p11)
}
  0x5c   :  { %183 = dma.vmem_to_hbm [thread:$0]  %s178_s12, 512, %s461_s4, [#allocation4], %s329_s27, %s329_s27, %s330_s28  }
  0x5d   :  { %325 = dma.done.wait [#allocation4], 512  }
  0x5e   :  { %326 = vsyncadd [#allocation4], 4294966784 }
  0x5f   :  { %187 = vsyncpa [#allocation3], 1 }
  0x60   :  { %188 = vsyncpa [#allocation6], 1 }
  0x61   :  { %189 = vsyncpa [#allocation9], 1 }
  0x62   :  { %190 = vsyncpa [#allocation4], 1 }

</bundles_post_ra>
